<compile_context>
chip_gen: v5e
topology: v5e:2x2
jax: 0.10.0
libtpu: 0.0.40
codegen_flags: <defaults>
</compile_context>

<pallas_src>
import functools
import numpy as np
import jax
import jax.numpy as jnp
from jax.experimental import pallas as pl
from jax.experimental.pallas import tpu as pltpu


# ----------------------------- hardware-aware budgets -----------------------------

@functools.lru_cache(maxsize=None)
def _vmem_limit_bytes():
    """Scoped-VMEM limit to request: ~half of physical VMEM, capped at 64 MiB."""
    try:
        cap = int(pltpu.get_tpu_info().vmem_capacity_bytes)
    except Exception:
        cap = 64 << 20                      # conservative fallback (safe on every generation)
    return max(16 << 20, min(cap // 2, 64 << 20))


@functools.lru_cache(maxsize=None)
def _block_budget_bytes():
    """Approximate live block-data budget per grid step (inputs+outputs+temps, incl. dbuf)."""
    return max(2 << 20, _vmem_limit_bytes() // 6)


@functools.lru_cache(maxsize=None)
def _num_tensorcores():
    """Best-effort TensorCore count per device; only used to decide whether splitting a grid
    that already fits in one block buys anything (megacore sharding on 2-TC chips)."""
    try:
        d = jax.devices()[0]
        for attr in ("num_cores", "core_count"):
            v = getattr(d, attr, None)
            if isinstance(v, int) and 0 < v <= 8:
                return v
        kind = str(getattr(d, "device_kind", "")).lower()
        if any(tok in kind for tok in ("v4", "v5p", "v7", "7x")):
            return 2
    except Exception:
        pass
    return 1


def _cparams():
    return pltpu.CompilerParams(dimension_semantics=("parallel",),
                                vmem_limit_bytes=_vmem_limit_bytes())


# ----------------------------- small helpers -----------------------------

def to_2tuple(v):
    return tuple(v) if isinstance(v, (tuple, list)) else (v, v)


def _row_tile(M, row_bytes):
    """Largest multiple-of-8 divisor of M whose block fits the per-step budget.  Only force a
    split (>=2 steps) when there is more than one TensorCore to shard the grid across."""
    if M <= 8 or M % 8 != 0:
        return M
    target = max(8, _block_budget_bytes() // max(int(row_bytes), 1))
    if _num_tensorcores() > 1:
        target = min(target, max(8, M // 2))
    best = 8
    t = 8
    while t <= M:
        if M % t == 0 and t <= target:
            best = t
        t += 8
    return best


def _pick_group(B_, N, C):
    """Windows per grid step: as large as the VMEM budget allows; only keep >=2 grid steps when
    a second TensorCore can actually use them."""
    per_win = N * (32 * C + 4 * N) * 4          # rough f32 live bytes per window (dbuf + temps)
    cap = max(1, _block_budget_bytes() // max(per_win, 1))
    g = 1
    for d in range(1, B_ + 1):
        if B_ % d == 0 and d <= cap:
            g = d
    if _num_tensorcores() > 1 and g == B_ and B_ > 1:
        for d in range(B_ - 1, 0, -1):
            if B_ % d == 0:
                g = d
                break
    return g


def _layernorm(v, g, b, eps=1e-5):
    mu = jnp.mean(v, axis=-1, keepdims=True)
    var = jnp.mean(jnp.square(v - mu), axis=-1, keepdims=True)
    return (v - mu) * jax.lax.rsqrt(var + eps) * g + b


_USE_TANH_GELU = False  # tanh form trades ~1e-3 deviation from nn.GELU for fewer VALU ops.


def _erf_approx(z):
    # Abramowitz & Stegun 7.1.26 rational approximation (|err| < 1.5e-7, f32-level exact).
    a1, a2, a3, a4, a5 = 0.254829592, -0.284496736, 1.421413741, -1.453152027, 1.061405429
    pc = 0.3275911
    az = jnp.abs(z)
    t = 1.0 / (1.0 + pc * az)
    poly = t * (a1 + t * (a2 + t * (a3 + t * (a4 + t * a5))))
    y = 1.0 - poly * jnp.exp(-az * az)
    return jnp.where(z < 0.0, -y, y)


def _gelu(x):
    if _USE_TANH_GELU:
        c = 0.7978845608028654
        return 0.5 * x * (1.0 + jnp.tanh(c * (x + 0.044715 * x * x * x)))
    return 0.5 * x * (1.0 + _erf_approx(x * 0.7071067811865476))


# ----------------------------- Pallas kernels -----------------------------

def _win_attn_kernel(*refs, nhead, scale, has_bias):
    """Fused per-window attention: LayerNorm -> QKV -> per-head softmax attention (+bias)
    -> output projection (heads accumulated into one f32 accumulator).
    Block: (G windows, N tokens, C channels)."""
    if has_bias:
        (x_ref, qkvw_ref, qkvb_ref, pw_ref, pb_ref, g_ref, b_ref, bias_ref, o_ref) = refs
    else:
        (x_ref, qkvw_ref, qkvb_ref, pw_ref, pb_ref, g_ref, b_ref, o_ref) = refs
        bias_ref = None
    G, N, C = x_ref.shape
    hd = C // nhead

    x = x_ref[...].astype(jnp.float32)
    xn = _layernorm(x, g_ref[...].astype(jnp.float32), b_ref[...].astype(jnp.float32))

    # Single lane-dense (G*N, 3C) QKV matmul; bf16 operands, f32 accumulation (MXU-native).
    qkv = jnp.dot(xn.reshape(G * N, C).astype(jnp.bfloat16), qkvw_ref[...],
                  preferred_element_type=jnp.float32) + qkvb_ref[...].astype(jnp.float32)
    qkv = qkv.reshape(G, N, 3 * C)

    acc = jnp.zeros((G * N, C), jnp.float32)
    for h in range(nhead):                       # static unroll; accumulate through sliced proj_w
        q = qkv[:, :, h * hd:(h + 1) * hd].astype(jnp.bfloat16)
        k = qkv[:, :, C + h * hd:C + (h + 1) * hd].astype(jnp.bfloat16)
        v = qkv[:, :, 2 * C + h * hd:2 * C + (h + 1) * hd].astype(jnp.bfloat16)
        s = jnp.einsum('gnd,gmd->gnm', q, k,
                       preferred_element_type=jnp.float32) * scale
        if has_bias:
            s = s + bias_ref[h].astype(jnp.float32)
        s = s - jnp.max(s, axis=-1, keepdims=True)
        p = jnp.exp(s)
        p = p * pl.reciprocal(jnp.sum(p, axis=-1, keepdims=True), approx=True)
        pv = jnp.einsum('gnm,gmd->gnd', p.astype(jnp.bfloat16), v,
                        preferred_element_type=jnp.float32)
        acc = acc + jnp.dot(pv.reshape(G * N, hd).astype(jnp.bfloat16),
                            pw_ref[h * hd:(h + 1) * hd, :],
                            preferred_element_type=jnp.float32)
    out = acc + pb_ref[...].astype(jnp.float32)
    o_ref[...] = out.reshape(G, N, C).astype(o_ref.dtype)


def _fuse_res_kernel(x_ref, x1_ref, x2_ref, x3_ref, g_ref, b_ref, o_ref):
    """xn = norm1(x); x4 = norm1(mixer(xn)) with mixer == identity; per-token 5-way softmax
    fusion over [xn, x1, x2, x3, x4]; plus the 'shortcut + x' residual."""
    # TODO(synk): Fused_Fourier_Conv_Mixer (attn4) source is not provided; modelled as identity.
    x = x_ref[...].astype(jnp.float32)           # raw shortcut
    g = g_ref[...].astype(jnp.float32)
    b = b_ref[...].astype(jnp.float32)
    xn = _layernorm(x, g, b)
    x4 = _layernorm(xn, g, b)                    # norm1 re-applied to attn4 output (as in reference)
    ks = [xn,
          x1_ref[...].astype(jnp.float32),
          x2_ref[...].astype(jnp.float32),
          x3_ref[...].astype(jnp.float32),
          x4]
    s = [jnp.sum(xn * kj, axis=-1, keepdims=True) for kj in ks]   # 5 x (TM, 1)
    m = s[0]
    for j in range(1, 5):
        m = jnp.maximum(m, s[j])
    e = [jnp.exp(sj - m) for sj in s]
    denom = e[0]
    for j in range(1, 5):
        denom = denom + e[j]
    inv = pl.reciprocal(denom, approx=True)
    out = x                                      # residual fused into the same write
    for j in range(5):
        out = out + (e[j] * inv) * ks[j]
    o_ref[...] = out.astype(o_ref.dtype)


def _ln_mlp_res_kernel(x_ref, g_ref, b_ref, w1_ref, b1_ref, w2_ref, b2_ref, o_ref):
    """norm2 -> fc1 -> GELU -> fc2 -> residual, one pass.  bf16 matmuls, f32 accumulation."""
    x = x_ref[...].astype(jnp.float32)
    xn = _layernorm(x, g_ref[...].astype(jnp.float32), b_ref[...].astype(jnp.float32))
    h = jnp.dot(xn.astype(jnp.bfloat16), w1_ref[...],
                preferred_element_type=jnp.float32) + b1_ref[...].astype(jnp.float32)
    h = _gelu(h)
    y = jnp.dot(h.astype(jnp.bfloat16), w2_ref[...],
                preferred_element_type=jnp.float32) + b2_ref[...].astype(jnp.float32)
    o_ref[...] = (x + y).astype(o_ref.dtype)


def _linear_ln_kernel(x_ref, w_ref, b_ref, g_ref, bb_ref, o_ref):
    """PatchEmbed: (patch matmul + bias) -> LayerNorm."""
    y = jnp.dot(x_ref[...].astype(jnp.bfloat16), w_ref[...],
                preferred_element_type=jnp.float32) + b_ref[...].astype(jnp.float32)
    o_ref[...] = _layernorm(y, g_ref[...].astype(jnp.float32),
                            bb_ref[...].astype(jnp.float32)).astype(o_ref.dtype)


def _ln_linear_kernel(x_ref, g_ref, b_ref, w_ref, o_ref):
    """PatchMerging: LayerNorm -> reduction matmul (no bias)."""
    xn = _layernorm(x_ref[...].astype(jnp.float32),
                    g_ref[...].astype(jnp.float32), b_ref[...].astype(jnp.float32))
    o_ref[...] = jnp.dot(xn.astype(jnp.bfloat16), w_ref[...],
                         preferred_element_type=jnp.float32).astype(o_ref.dtype)


# ----------------------------- kernel wrappers -----------------------------

def _rowwise_call(kernel, row_args, bcast_args, out_cols, out_dtype, row_bytes=None):
    """Tile the row-parallel args over M with a 1-D 'parallel' grid; broadcast args are whole."""
    M = row_args[0].shape[0]
    if row_bytes is None:
        row_bytes = 8 * (sum(a.shape[1] for a in row_args) + 4 * out_cols)
    TM = _row_tile(M, row_bytes)
    grid = (M // TM,)
    in_specs = [pl.BlockSpec((TM, a.shape[1]), lambda i: (i, 0)) for a in row_args]
    in_specs += [pl.BlockSpec(a.shape, lambda i: (0, 0)) for a in bcast_args]
    return pl.pallas_call(
        kernel,
        out_shape=jax.ShapeDtypeStruct((M, out_cols), out_dtype),
        grid=grid,
        in_specs=in_specs,
        out_specs=pl.BlockSpec((TM, out_cols), lambda i: (i, 0)),
        compiler_params=_cparams(),
    )(*row_args, *bcast_args)


def window_attention_fused(x_windows, p, norm_g, norm_b, nhead, bias=None):
    """x_windows: (B_, N, C) RAW (pre-norm1) window tokens.  bias: None or (nhead, N, N)."""
    B_, N, C = x_windows.shape
    assert C % nhead == 0, "d_model must be divisible by nhead"
    scale = (C // nhead) ** -0.5
    G = _pick_group(B_, N, C)
    kernel = functools.partial(_win_attn_kernel, nhead=nhead, scale=scale,
                               has_bias=bias is not None)
    in_specs = [
        pl.BlockSpec((G, N, C), lambda i: (i, 0, 0)),
        pl.BlockSpec((C, 3 * C), lambda i: (0, 0)),
        pl.BlockSpec((1, 3 * C), lambda i: (0, 0)),
        pl.BlockSpec((C, C), lambda i: (0, 0)),
        pl.BlockSpec((1, C), lambda i: (0, 0)),
        pl.BlockSpec((1, C), lambda i: (0, 0)),
        pl.BlockSpec((1, C), lambda i: (0, 0)),
    ]
    args = [x_windows, p['qkv_w'], p['qkv_b'].reshape(1, -1),
            p['proj_w'], p['proj_b'].reshape(1, -1),
            norm_g.reshape(1, -1), norm_b.reshape(1, -1)]
    if bias is not None:
        in_specs.append(pl.BlockSpec((nhead, N, N), lambda i: (0, 0, 0)))
        args.append(bias)
    return pl.pallas_call(
        kernel,
        out_shape=jax.ShapeDtypeStruct((B_, N, C), x_windows.dtype),
        grid=(B_ // G,),
        in_specs=in_specs,
        out_specs=pl.BlockSpec((G, N, C), lambda i: (i, 0, 0)),
        compiler_params=_cparams(),
    )(*args)


# ----------------------------- model glue (plain JAX) -----------------------------

def window_partition(x, window_size):
    wh, ww = window_size
    B, H, W, C = x.shape
    x = x.reshape(B, H // wh, wh, W // ww, ww, C)
    return jnp.transpose(x, (0, 1, 3, 2, 4, 5)).reshape(-1, wh, ww, C)


def window_reverse(windows, window_size, H, W):
    wh, ww = window_size
    nH, nW = H // wh, W // ww
    C = windows.shape[-1]
    B = windows.shape[0] // (nH * nW)
    x = windows.reshape(B, nH, nW, wh, ww, C)
    return jnp.transpose(x, (0, 1, 3, 2, 4, 5)).reshape(B, H, W, C)


def strip_attention(x, shape, p, norm_g, norm_b, nhead, strip_width, is_vertical):
    """StripAttention: norm1 is fused inside the attention kernel (per-token LN commutes with
    window partitioning), so `x` here is the raw (pre-norm) activation."""
    H, W = shape
    B, Nt, C = x.shape
    if not is_vertical:
        # Horizontal strips are contiguous rows of the (B, L, C) layout -> partition/reverse
        # are free reshapes (no HBM relayout passes).
        xw = x.reshape(B * (H // strip_width), strip_width * W, C)
        wins = window_attention_fused(xw, p, norm_g, norm_b, nhead)
        return wins.reshape(B, Nt, C)
    xi = x.reshape(B, H, W, C)
    ws = (H, strip_width)
    xw = window_partition(xi, ws).reshape(-1, ws[0] * ws[1], C)
    wins = window_attention_fused(xw, p, norm_g, norm_b, nhead)
    xo = window_reverse(wins.reshape(-1, ws[0], ws[1], C), ws, H, W)
    return xo.reshape(B, Nt, C)


def window_attention_kai(x, shape, p, norm_g, norm_b, nhead, window_size):
    H, W = shape
    Bi, Ni, Ci = x.shape
    wh, ww = window_size
    xi = x.reshape(Bi, H, W, Ci)
    xw = window_partition(xi, window_size).reshape(-1, wh * ww, Ci)
    # Relative-position bias is precomputed at init as (nhead, N, N): no gather in the forward.
    wins = window_attention_fused(xw, p, norm_g, norm_b, nhead, bias=p['rel_bias'])
    xo = window_reverse(wins.reshape(-1, wh, ww, Ci), window_size, H, W)
    return xo.reshape(Bi, Ni, Ci)


def strip_attention_block(x, p, input_resolution, nhead, strip_width):
    H, W = input_resolution
    B, L, C = x.shape
    x1 = strip_attention(x, (H, W), p['attn1'], p['norm1_g'], p['norm1_b'],
                         nhead, strip_width, is_vertical=False)
    x2 = strip_attention(x, (H, W), p['attn2'], p['norm1_g'], p['norm1_b'],
                         nhead, strip_width, is_vertical=True)
    x3 = window_attention_kai(x, (H, W), p['attn3'], p['norm1_g'], p['norm1_b'],
                              nhead, (2 * strip_width, 2 * strip_width))
    M = B * L
    # Fused: norm1, identity-mixer x4 path, 5-way fusion softmax, residual.
    y = _rowwise_call(_fuse_res_kernel,
                      [x.reshape(M, C), x1.reshape(M, C),
                       x2.reshape(M, C), x3.reshape(M, C)],
                      [p['norm1_g'].reshape(1, -1), p['norm1_b'].reshape(1, -1)],
                      C, x.dtype,
                      row_bytes=8 * 10 * C)
    # Fused: norm2 -> fc1 -> GELU -> fc2 -> residual.
    mp = p['mlp']
    hidden = mp['fc1_w'].shape[1]
    out = _rowwise_call(_ln_mlp_res_kernel, [y],
                        [p['norm2_g'].reshape(1, -1), p['norm2_b'].reshape(1, -1),
                         mp['fc1_w'], mp['fc1_b'].reshape(1, -1),
                         mp['fc2_w'], mp['fc2_b'].reshape(1, -1)],
                        C, x.dtype,
                        row_bytes=4 * (6 * C + 6 * hidden))
    return out.reshape(B, L, C)


def patch_merging(x, H, W, p):
    B, L, C = x.shape
    xi = x.reshape(B, H, W, C)
    if H % 2 != 0:
        xi = xi[:, :-1, :, :]
    if W % 2 != 0:
        xi = xi[:, :, :-1, :]
    x0 = xi[:, 0::2, 0::2, :]
    x1 = xi[:, 1::2, 0::2, :]
    x2 = xi[:, 0::2, 1::2, :]
    x3 = xi[:, 1::2, 1::2, :]
    xc = jnp.concatenate([x0, x1, x2, x3], axis=-1)
    H2, W2 = xc.shape[1], xc.shape[2]
    xc = xc.reshape(B * H2 * W2, 4 * C)
    out = _rowwise_call(_ln_linear_kernel, [xc],
                        [p['norm_g'].reshape(1, -1), p['norm_b'].reshape(1, -1),
                         p['red_w']],
                        2 * C, xc.dtype)
    return out.reshape(B, H2 * W2, 2 * C), (H2, W2)


def patch_embed(x_nchw, p, patch_size, embed_dim):
    B, Cin, H, W = x_nchw.shape
    ph, pw = patch_size
    Hp, Wp = H // ph, W // pw
    x = x_nchw.reshape(B, Cin, Hp, ph, Wp, pw)
    x = jnp.transpose(x, (0, 2, 4, 1, 3, 5)).reshape(B * Hp * Wp, Cin * ph * pw)
    out = _rowwise_call(_linear_ln_kernel, [x],
                        [p['proj_w_mat'], p['proj_b'].reshape(1, -1),
                         p['norm_g'].reshape(1, -1), p['norm_b'].reshape(1, -1)],
                        embed_dim, x.dtype)
    return out.reshape(B, Hp * Wp, embed_dim), (Hp, Wp)


def encoder_forward(x_nchw, params, cfg, arbitrary_input=False):
    # arbitrary_input=False path: input resolution matches construction (no seq_padding needed).
    x, (H, W) = patch_embed(x_nchw, params['patch_embed'],
                            to_2tuple(cfg['patch_size']), cfg['embed_dim'])
    pr = (cfg['img_size'] // cfg['patch_size'], cfg['img_size'] // cfg['patch_size'])
    for i, layer in enumerate(params['layers']):
        res = (pr[0] // (2 ** i), pr[1] // (2 ** i))
        for blk in layer['blocks']:
            x = strip_attention_block(x, blk, res, cfg['nhead'][i], cfg['strip_width'])
            H, W = res
        if layer['downsample'] is not None:
            x, (H, W) = patch_merging(x, res[0], res[1], layer['downsample'])
    return x, arbitrary_input, (H, W)


# ----------------------------- deterministic parameter init -----------------------------

def trunc_normal(key, shape, std=0.02):
    return (std * jax.random.truncated_normal(key, -2.0, 2.0, shape)).astype(jnp.float32)


def relative_position_index(wh, ww):
    coords = np.stack(np.meshgrid(np.arange(wh), np.arange(ww), indexing='ij'))
    cf = coords.reshape(2, -1)
    rel = cf[:, :, None] - cf[:, None, :]
    rel = rel.transpose(1, 2, 0).astype(np.int64)
    rel[:, :, 0] += wh - 1
    rel[:, :, 1] += ww - 1
    rel[:, :, 0] *= 2 * ww - 1
    return rel.sum(-1)


def init_attn_params(key, d):
    # TODO(synk): timm-style `Attention` used by StripAttention is assumed to be the standard
    # qkv Linear -> scaled softmax -> proj Linear module.
    k1, k2 = jax.random.split(key)
    return dict(qkv_w=trunc_normal(k1, (d, 3 * d)).astype(jnp.bfloat16),
                qkv_b=jnp.zeros((3 * d,), jnp.float32),
                proj_w=trunc_normal(k2, (d, d)).astype(jnp.bfloat16),
                proj_b=jnp.zeros((d,), jnp.float32))


def init_block_params(key, d, nhead, strip_width, mlp_ratio):
    keys = jax.random.split(key, 6)
    ws = (2 * strip_width, 2 * strip_width)
    N = ws[0] * ws[1]
    attn3 = init_attn_params(keys[2], d)
    table = trunc_normal(keys[3], ((2 * ws[0] - 1) * (2 * ws[1] - 1), nhead))
    rpi = jnp.asarray(relative_position_index(*ws).reshape(-1), jnp.int32)
    # Hoist the rel-pos-bias gather + transpose out of the forward pass (static per block).
    attn3['rel_bias'] = jnp.transpose(table[rpi].reshape(N, N, nhead), (2, 0, 1))
    hidden = int(d * mlp_ratio)
    return dict(
        norm1_g=jnp.ones((d,), jnp.float32), norm1_b=jnp.zeros((d,), jnp.float32),
        attn1=init_attn_params(keys[0], d),
        attn2=init_attn_params(keys[1], d),
        attn3=attn3,
        norm2_g=jnp.ones((d,), jnp.float32), norm2_b=jnp.zeros((d,), jnp.float32),
        mlp=dict(fc1_w=trunc_normal(keys[4], (d, hidden)).astype(jnp.bfloat16),
                 fc1_b=jnp.zeros((hidden,), jnp.float32),
                 fc2_w=trunc_normal(keys[5], (hidden, d)).astype(jnp.bfloat16),
                 fc2_b=jnp.zeros((d,), jnp.float32)),
    )


def init_encoder_params(key, cfg):
    n_layers = len(cfg['depths'])
    keys = jax.random.split(key, n_layers + 2)
    p = to_2tuple(cfg['patch_size'])
    conv_w = 0.02 * jax.random.normal(keys[0], (cfg['embed_dim'], cfg['in_chans'], p[0], p[1]),
                                      jnp.float32)
    pe = dict(
        # Conv2d(k=s=p) as an exact matmul; repack hoisted to init time.
        proj_w_mat=conv_w.reshape(cfg['embed_dim'], -1).T.astype(jnp.bfloat16),
        proj_b=jnp.zeros((cfg['embed_dim'],), jnp.float32),
        norm_g=jnp.ones((cfg['embed_dim'],), jnp.float32),
        norm_b=jnp.zeros((cfg['embed_dim'],), jnp.float32),
    )
    layers = []
    for i in range(n_layers):
        d = cfg['embed_dim'] * (2 ** i)
        lkeys = jax.random.split(keys[i + 1], cfg['depths'][i] + 1)
        blocks = [init_block_params(lkeys[j], d, cfg['nhead'][i], cfg['strip_width'],
                                    cfg['mlp_ratio'])
                  for j in range(cfg['depths'][i])]
        if i < n_layers - 1:
            downsample = dict(norm_g=jnp.ones((4 * d,), jnp.float32),
                              norm_b=jnp.zeros((4 * d,), jnp.float32),
                              red_w=trunc_normal(lkeys[-1], (4 * d, 2 * d)).astype(jnp.bfloat16))
        else:
            downsample = None
        layers.append(dict(blocks=blocks, downsample=downsample))
    return dict(patch_embed=pe, layers=layers)


# ----------------------------- main -----------------------------

if __name__ == "__main__":
    # Small config consistent with the Encoder: 32x32 image, patch 4 -> 8x8 patches,
    # embed_dim 32, 2 stages (depths [1,1], heads [2,4]), strip_width 2 (window 4x4).
    cfg = dict(img_size=32, patch_size=4, in_chans=3, embed_dim=32,
               depths=[1, 1], nhead=[2, 4], strip_width=2, mlp_ratio=4.0)

    key = jax.random.PRNGKey(0)
    pkey, xkey = jax.random.split(key)
    params = init_encoder_params(pkey, cfg)

    x = jax.random.normal(xkey, (2, cfg['in_chans'], cfg['img_size'], cfg['img_size']),
                          jnp.float32)

    out, arb, (H, W) = encoder_forward(x, params, cfg, arbitrary_input=False)
    jax.block_until_ready(out)
    assert out.shape == (2, 16, 64) and (H, W) == (4, 4) and arb is False
    print("KERNEL_OK")
</pallas_src>

<mosaic_0001>
module attributes {stable_mosaic.version = 11 : i64} {
  func.func @_linear_ln_kernel(%arg0: i32, %arg1: memref<128x48xf32, #tpu.memory_space<vmem>>, %arg2: memref<48x32xbf16, #tpu.memory_space<vmem>>, %arg3: memref<1x32xf32, #tpu.memory_space<vmem>>, %arg4: memref<1x32xf32, #tpu.memory_space<vmem>>, %arg5: memref<1x32xf32, #tpu.memory_space<vmem>>, %arg6: memref<128x32xf32, #tpu.memory_space<vmem>>) attributes {dimension_semantics = [#tpu.dimension_semantics<parallel>], iteration_bounds = array<i64: 1>, scalar_prefetch = 0 : i64, scratch_operands = 0 : i64, tpu.core_type = #tpu.core_type<tc>, window_params = [{transform_indices = @transform_0, window_bounds = array<i64: 128, 48>}, {pipeline_mode = #tpu.pipeline_mode<synchronous>, transform_indices = @transform_1, window_bounds = array<i64: 48, 32>}, {pipeline_mode = #tpu.pipeline_mode<synchronous>, transform_indices = @transform_2, window_bounds = array<i64: 1, 32>}, {pipeline_mode = #tpu.pipeline_mode<synchronous>, transform_indices = @transform_3, window_bounds = array<i64: 1, 32>}, {pipeline_mode = #tpu.pipeline_mode<synchronous>, transform_indices = @transform_4, window_bounds = array<i64: 1, 32>}, {transform_indices = @transform_5, window_bounds = array<i64: 128, 32>}]} {
    %c0 = arith.constant 0 : index
    %c0_0 = arith.constant 0 : index
    %0 = vector.load %arg1[%c0, %c0_0] : memref<128x48xf32, #tpu.memory_space<vmem>>, vector<128x48xf32>
    %1 = arith.truncf %0 : vector<128x48xf32> to vector<128x48xbf16>
    %c0_1 = arith.constant 0 : index
    %c0_2 = arith.constant 0 : index
    %2 = vector.load %arg2[%c0_1, %c0_2] : memref<48x32xbf16, #tpu.memory_space<vmem>>, vector<48x32xbf16>
    %cst = arith.constant dense<0.000000e+00> : vector<128x32xf32>
    %3 = tpu.matmul %1, %2, %cst {dimension_numbers = #tpu.dot_dimension_numbers<[1], [0], [0], [1], [0, 0, 1, 1], [], []>} : vector<128x48xbf16>, vector<48x32xbf16>, vector<128x32xf32> -> vector<128x32xf32>
    %c0_3 = arith.constant 0 : index
    %c0_4 = arith.constant 0 : index
    %4 = vector.load %arg3[%c0_3, %c0_4] : memref<1x32xf32, #tpu.memory_space<vmem>>, vector<1x32xf32>
    %5 = vector.broadcast %4 : vector<1x32xf32> to vector<128x32xf32>
    %6 = arith.addf %3, %5 : vector<128x32xf32>
    %c0_5 = arith.constant 0 : index
    %c0_6 = arith.constant 0 : index
    %7 = vector.load %arg4[%c0_5, %c0_6] : memref<1x32xf32, #tpu.memory_space<vmem>>, vector<1x32xf32>
    %c0_7 = arith.constant 0 : index
    %c0_8 = arith.constant 0 : index
    %8 = vector.load %arg5[%c0_7, %c0_8] : memref<1x32xf32, #tpu.memory_space<vmem>>, vector<1x32xf32>
    %cst_9 = arith.constant dense<0.000000e+00> : vector<128xf32>
    %9 = vector.multi_reduction <add>, %6, %cst_9 [1] : vector<128x32xf32> to vector<128xf32>
    %10 = vector.shape_cast %9 : vector<128xf32> to vector<128x1xf32>
    %cst_10 = arith.constant 3.200000e+01 : f32
    %11 = vector.broadcast %cst_10 : f32 to vector<128x1xf32>
    %12 = arith.divf %10, %11 : vector<128x1xf32>
    %13 = vector.broadcast %12 : vector<128x1xf32> to vector<128x32xf32>
    %14 = arith.subf %6, %13 : vector<128x32xf32>
    %15 = arith.mulf %14, %14 : vector<128x32xf32>
    %cst_11 = arith.constant dense<0.000000e+00> : vector<128xf32>
    %16 = vector.multi_reduction <add>, %15, %cst_11 [1] : vector<128x32xf32> to vector<128xf32>
    %17 = vector.shape_cast %16 : vector<128xf32> to vector<128x1xf32>
    %cst_12 = arith.constant 3.200000e+01 : f32
    %18 = vector.broadcast %cst_12 : f32 to vector<128x1xf32>
    %19 = arith.divf %17, %18 : vector<128x1xf32>
    %20 = vector.broadcast %12 : vector<128x1xf32> to vector<128x32xf32>
    %21 = arith.subf %6, %20 : vector<128x32xf32>
    %cst_13 = arith.constant 9.99999974E-6 : f32
    %22 = vector.broadcast %cst_13 : f32 to vector<128x1xf32>
    %23 = arith.addf %19, %22 : vector<128x1xf32>
    %24 = math.rsqrt %23 : vector<128x1xf32>
    %25 = vector.broadcast %24 : vector<128x1xf32> to vector<128x32xf32>
    %26 = arith.mulf %21, %25 : vector<128x32xf32>
    %27 = vector.broadcast %7 : vector<1x32xf32> to vector<128x32xf32>
    %28 = arith.mulf %26, %27 : vector<128x32xf32>
    %29 = vector.broadcast %8 : vector<1x32xf32> to vector<128x32xf32>
    %30 = arith.addf %28, %29 : vector<128x32xf32>
    %c0_14 = arith.constant 0 : index
    %c0_15 = arith.constant 0 : index
    %31 = vector.load %arg6[%c0_14, %c0_15] : memref<128x32xf32, #tpu.memory_space<vmem>>, vector<128x32xf32>
    tpu.vector_store %arg6[%c0_14, %c0_15], %30 {strides = array<i32>} : memref<128x32xf32, #tpu.memory_space<vmem>>, vector<128x32xf32>,
    return
  }
  func.func @transform_0(%arg0: i32) -> (i32, i32) {
    %c0_i32 = arith.constant 0 : i32
    %c0_i32_0 = arith.constant 0 : i32
    return %arg0, %c0_i32 : i32, i32
  }
  func.func @transform_1(%arg0: i32) -> (i32, i32) {
    %c0_i32 = arith.constant 0 : i32
    %c0_i32_0 = arith.constant 0 : i32
    %c0_i32_1 = arith.constant 0 : i32
    return %c0_i32, %c0_i32_0 : i32, i32
  }
  func.func @transform_2(%arg0: i32) -> (i32, i32) {
    %c0_i32 = arith.constant 0 : i32
    %c0_i32_0 = arith.constant 0 : i32
    %c0_i32_1 = arith.constant 0 : i32
    return %c0_i32, %c0_i32_0 : i32, i32
  }
  func.func @transform_3(%arg0: i32) -> (i32, i32) {
    %c0_i32 = arith.constant 0 : i32
    %c0_i32_0 = arith.constant 0 : i32
    %c0_i32_1 = arith.constant 0 : i32
    return %c0_i32, %c0_i32_0 : i32, i32
  }
  func.func @transform_4(%arg0: i32) -> (i32, i32) {
    %c0_i32 = arith.constant 0 : i32
    %c0_i32_0 = arith.constant 0 : i32
    %c0_i32_1 = arith.constant 0 : i32
    return %c0_i32, %c0_i32_0 : i32, i32
  }
  func.func @transform_5(%arg0: i32) -> (i32, i32) {
    %c0_i32 = arith.constant 0 : i32
    %c0_i32_0 = arith.constant 0 : i32
    return %arg0, %c0_i32 : i32, i32
  }
}

</mosaic_0001>

<bundles_post_ra>
// kernel: tpu_custom_call.1
= control target key start
LH: loop header
LB: loop body
LE: loop exit
PB: predicated region body
PF: predicated region fallthrough
CT: control target
= control target key end

     0   :  { %vm73_vm0 = vcmask 392192   ;;  %vm149_vm1 = vcmask 261120   ;;  %s1160_s1 = inlined_call_operand.vmem [shape: bf16[48,32], index: 1, kind: input, shape index: {}]   ;;  %s1161_s0 = inlined_call_operand.vmem [shape: f32[128,48], index: 0, kind: input, shape index: {}]   ;;  %s1162_s2 = inlined_call_operand.vmem [shape: f32[1,32], index: 2, kind: input, shape index: {}]   ;;  %s1163_s3 = inlined_call_operand.vmem [shape: f32[1,32], index: 3, kind: input, shape index: {}]   ;;  %s1164_s4 = inlined_call_operand.vmem [shape: f32[1,32], index: 4, kind: input, shape index: {}]   ;;  %s1165_s5 = inlined_call_operand.vmem [shape: f32[128,32], index: 5, kind: output, shape index: {}]  }
   0x1   :  { %v589_v0 = vld [vmem:[%s1160_s1 + $0x10] sm:$0xff]  ;;  %v588_v1 = vld [vmem:[%s1160_s1 + $0x8] sm:$0xff]  ;;  %v587_v2 = vld [vmem:[%s1160_s1] sm:$0xff] }
   0x2   :  { %103 = vmatpush.bf16.msra.mxu0 %v589_v0  ;;  %590 = vmatpush.bf16.msra.mxu1 %v589_v0  ;;  %v21_v3 = vld [vmem:[%s1161_s0] sm:$0xff]  ;;  %v22_v4 = vld [vmem:[%s1161_s0 + $0x8] sm:$0xff]  ;;  %v23_v15 = vld [vmem:[%s1161_s0 + $0x10] sm:$0xff] }
   0x3   :  { %591 = vmatpush.bf16.msra.mxu2 %v589_v0  ;;  %592 = vmatpush.bf16.msra.mxu3 %v589_v0  ;;  %v25_v5 = vld [vmem:[%s1161_s0 + $0x20] sm:$0xff]  ;;  %v26_v6 = vld [vmem:[%s1161_s0 + $0x28] sm:$0xff]  ;;  %v37_v11 = vpack.c.bf16 %v22_v4, %v21_v3  ;;  %v24_v16 = vld [vmem:[%s1161_s0 + $0x18] sm:$0xff] }
   0x4   :  { %v29_v7 = vld [vmem:[%s1161_s0 + $0x40] sm:$0xff]  ;;  %v30_v8 = vld [vmem:[%s1161_s0 + $0x48] sm:$0xff]  ;;  %v39_v12 = vpack.c.bf16 %v26_v6, %v25_v5  ;;  %v31_v17 = vld [vmem:[%s1161_s0 + $0x50] sm:$0xff]  ;;  %v38_v23 = vpack.c.bf16 %v24_v16, %v23_v15 }
   0x5   :  { %v33_v9 = vld [vmem:[%s1161_s0 + $0x60] sm:$0xff]  ;;  %v34_v10 = vld [vmem:[%s1161_s0 + $0x68] sm:$0xff]  ;;  %v41_v13 = vpack.c.bf16 %v30_v8, %v29_v7  ;;  %v27_v18 = vld [vmem:[%s1161_s0 + $0x30] sm:$0xff] }
   0x6   :  { %104 = vmatpush.bf16.msra.mxu0 %v588_v1  ;;  %593 = vmatpush.bf16.msra.mxu1 %v588_v1  ;;  %v43_v14 = vpack.c.bf16 %v34_v10, %v33_v9  ;;  %v28_v19 = vld [vmem:[%s1161_s0 + $0x38] sm:$0xff]  ;;  %v35_v21 = vld [vmem:[%s1161_s0 + $0x70] sm:$0xff]  ;;  %v736_v27 = vld [vmem:[%s1162_s2] ss:$0 sm:$0xff] }
   0x7   :  { %594 = vmatpush.bf16.msra.mxu2 %v588_v1  ;;  %595 = vmatpush.bf16.msra.mxu3 %v588_v1  ;;  %v32_v20 = vld [vmem:[%s1161_s0 + $0x58] sm:$0xff]  ;;  %v40_v24 = vpack.c.bf16 %v28_v19, %v27_v18 }
   0x8   :  { %v36_v22 = vld [vmem:[%s1161_s0 + $0x78] sm:$0xff]  ;;  %v42_v25 = vpack.c.bf16 %v32_v20, %v31_v17 }
   0x9   :  { %v44_v26 = vpack.c.bf16 %v36_v22, %v35_v21 }
   0xa   :  { %105 = vmatpush.bf16.msra.mxu0 %v587_v2  ;;  %596 = vmatpush.bf16.msra.mxu1 %v587_v2 }
   0xb   :  { %597 = vmatpush.bf16.msra.mxu2 %v587_v2  ;;  %598 = vmatpush.bf16.msra.mxu3 %v587_v2 }
   0xd   :  { %579 = vmatmul.msk.bf16.vlgmr.msra.gmra.mxu0 %vm73_vm0, %v37_v11  ;;  %581 = vmatmul.msk.bf16.vlgmr.msra.gmra.mxu1 %vm73_vm0, %v39_v12  ;;  %v637_v12 = vmov 32.0  }
   0xe   :  { %583 = vmatmul.msk.bf16.vlgmr.msra.gmra.mxu2 %vm73_vm0, %v41_v13  ;;  %585 = vmatmul.msk.bf16.vlgmr.msra.gmra.mxu3 %vm73_vm0, %v43_v14  ;;  %603 = vrcp.f32 %v637_v12 }
  0x14   :  { %v604_v13 = vpop.eup %603 }
  0x15   :  { %v199_v14 = vmul.f32 32.0, %v604_v13  ;;  %vm203_vm2 = vweird.f32 %v604_v13 }
  0x17   :  { %v200_v15 = vsub.f32 1.0, %v199_v14 }
  0x19   :  { %v201_v16 = vmul.f32 %v604_v13, %v200_v15 }
  0x1b   :  { %v202_v17 = vadd.f32 %v604_v13, %v201_v16 }
  0x1d   :  { %580 = vmatmul.msk.bf16.gmra.mxu0 %vm73_vm0, %v38_v23  ;;  %582 = vmatmul.msk.bf16.gmra.mxu1 %vm73_vm0, %v40_v24  ;;  %v818_v18 = vsel %vm203_vm2, %v604_v13, %v202_v17 }
  0x1e   :  { %584 = vmatmul.msk.bf16.gmra.mxu2 %vm73_vm0, %v42_v25  ;;  %586 = vmatmul.msk.bf16.gmra.mxu3 %vm73_vm0, %v44_v26 }
  0x8a   :  { %v107_v28 = vpop.f32.mrf.mxu0  ;;  %v117_v29 = vpop.f32.mrf.mxu1 }
  0x8b   :  { %v739_v30 = vadd.f32 %v736_v27, %v107_v28  ;;  %v742_v31 = vadd.f32 %v736_v27, %v117_v29 }
  0x8d   :  { %v162_v32 = vsel %vm149_vm1, %v742_v31, 0.0  ;;  %v150_v33 = vsel %vm149_vm1, %v739_v30, 0.0 }
  0x8e   :  { %163 = vadd.xlane.f32.xlu2 %v162_v32  ;;  %151 = vadd.xlane.f32.xlu0 %v150_v33 }
  0x91   :  { %v127_v34 = vpop.f32.mrf.mxu2  ;;  %v137_v35 = vpop.f32.mrf.mxu3 }
  0x92   :  { %v749_v36 = vadd.f32 %v736_v27, %v127_v34  ;;  %v752_v37 = vadd.f32 %v736_v27, %v137_v35  ;;  %v109_v38 = vpop.f32.mrf.mxu0  ;;  %v119_v41 = vpop.f32.mrf.mxu1 }
  0x93   :  { %v759_v42 = vadd.f32 %v736_v27, %v109_v38  ;;  %v762_v43 = vadd.f32 %v736_v27, %v119_v41 }
  0x94   :  { %v174_v39 = vsel %vm149_vm1, %v749_v36, 0.0  ;;  %v186_v40 = vsel %vm149_vm1, %v752_v37, 0.0 }
  0x95   :  { %v165_v49 = vsel %vm149_vm1, %v762_v43, 0.0  ;;  %v153_v50 = vsel %vm149_vm1, %v759_v42, 0.0 }
  0x96   :  { %175 = vadd.xlane.f32.xlu2 %v174_v39  ;;  %187 = vadd.xlane.f32.xlu0 %v186_v40 }
  0x99   :  { %v129_v44 = vpop.f32.mrf.mxu2  ;;  %v139_v45 = vpop.f32.mrf.mxu3 }
  0x9a   :  { %v765_v46 = vadd.f32 %v736_v27, %v139_v45  ;;  %v112_v48 = vpop.f32.mrf.mxu0  ;;  %v777_v52 = vadd.f32 %v736_v27, %v129_v44  ;;  %v122_v58 = vpop.f32.mrf.mxu1 }
  0x9b   :  { %v774_v51 = vadd.f32 %v736_v27, %v112_v48  ;;  %v787_v59 = vadd.f32 %v736_v27, %v122_v58 }
  0x9c   :  { %v189_v47 = vsel %vm149_vm1, %v765_v46, 0.0  ;;  %v177_v56 = vsel %vm149_vm1, %v777_v52, 0.0 }
  0x9d   :  { %190 = vadd.xlane.f32.xlu1 %v189_v47  ;;  %v156_v54 = vsel %vm149_vm1, %v774_v51, 0.0  ;;  %v168_v63 = vsel %vm149_vm1, %v787_v59, 0.0 }
  0x9e   :  { %166 = vadd.xlane.f32.xlu2 %v165_v49  ;;  %154 = vadd.xlane.f32.xlu0 %v153_v50 }
  0xa1   :  { %v132_v53 = vpop.f32.mrf.mxu2  ;;  %v142_v55 = vpop.f32.mrf.mxu3 }
  0xa2   :  { %v784_v57 = vadd.f32 %v736_v27, %v132_v53  ;;  %v114_v2 = vpop.f32.mrf.mxu0  ;;  %v799_v3 = vadd.f32 %v736_v27, %v142_v55  ;;  %v124_v9 = vpop.f32.mrf.mxu1 }
  0xa3   :  { %v805_v5 = vadd.f32 %v736_v27, %v114_v2  ;;  %v814_v10 = vadd.f32 %v736_v27, %v124_v9 }
  0xa4   :  { %v180_v62 = vsel %vm149_vm1, %v784_v57, 0.0  ;;  %v192_v6 = vsel %vm149_vm1, %v799_v3, 0.0 }
  0xa5   :  { %157 = vadd.xlane.f32.xlu1 %v156_v54  ;;  %v159_v8 = vsel %vm149_vm1, %v805_v5, 0.0  ;;  %v171_v11 = vsel %vm149_vm1, %v814_v10, 0.0 }
  0xa6   :  { %178 = vadd.xlane.f32.xlu0 %v177_v56 }
  0xa9   :  { %v134_v60 = vpop.f32.mrf.mxu2  ;;  %v144_v1 = vpop.f32.mrf.mxu3 }
  0xaa   :  { %v790_v61 = vadd.f32 %v736_v27, %v134_v60  ;;  %v802_v4 = vadd.f32 %v736_v27, %v144_v1 }
  0xac   :  { %v183_v0 = vsel %vm149_vm1, %v790_v61, 0.0  ;;  %v195_v7 = vsel %vm149_vm1, %v802_v4, 0.0 }
  0xad   :  { %184 = vadd.xlane.f32.xlu2 %v183_v0  ;;  %181 = vadd.xlane.f32.xlu1 %v180_v62 }
  0xae   :  { %169 = vadd.xlane.f32.xlu0 %v168_v63 }
  0xb5   :  { %193 = vadd.xlane.f32.xlu2 %v192_v6  ;;  %160 = vadd.xlane.f32.xlu1 %v159_v8 }
  0xb6   :  { %196 = vadd.xlane.f32.xlu0 %v195_v7 }
  0xbd   :  { %172 = vadd.xlane.f32.xlu1 %v171_v11 }
 0x101   :  { %v164_v19 = vpop.xlane.xlu2 %163  ;;  %v152_v20 = vpop.xlane.xlu0 %151 }
 0x102   :  { %v209_v21 = vmul.f32 %v818_v18, %v164_v19  ;;  %v205_v22 = vmul.f32 %v818_v18, %v152_v20 }
 0x104   :  { %v823_v23 = vsub.f32 %v742_v31, %v209_v21  ;;  %v826_v24 = vsub.f32 %v739_v30, %v205_v22 }
 0x106   :  { %v241_v25 = vmul.f32 %v823_v23, %v823_v23  ;;  %v237_v26 = vmul.f32 %v826_v24, %v826_v24 }
 0x108   :  { %v265_v27 = vsel %vm149_vm1, %v241_v25, 0.0  ;;  %v253_v28 = vsel %vm149_vm1, %v237_v26, 0.0 }
 0x109   :  { %266 = vadd.xlane.f32.xlu2 %v265_v27  ;;  %v176_v29 = vpop.xlane.xlu2 %175  ;;  %254 = vadd.xlane.f32.xlu1 %v253_v28  ;;  %v188_v32 = vpop.xlane.xlu0 %187 }
 0x10a   :  { %v213_v31 = vmul.f32 %v818_v18, %v176_v29  ;;  %v217_v33 = vmul.f32 %v818_v18, %v188_v32 }
 0x10c   :  { %v837_v30 = vsub.f32 %v749_v36, %v213_v31  ;;  %v840_v34 = vsub.f32 %v752_v37, %v217_v33 }
 0x10e   :  { %v245_v35 = vmul.f32 %v837_v30, %v837_v30  ;;  %v249_v38 = vmul.f32 %v840_v34, %v840_v34 }
 0x110   :  { %v846_v39 = vpop.xlane.xlu1 %190  ;;  %v277_v40 = vsel %vm149_vm1, %v245_v35, 0.0  ;;  %v289_v41 = vsel %vm149_vm1, %v249_v38, 0.0 }
 0x111   :  { %v167_v44 = vpop.xlane.xlu2 %166  ;;  %278 = vadd.xlane.f32.xlu0 %v277_v40  ;;  %290 = vadd.xlane.f32.xlu1 %v289_v41  ;;  %v155_v36 = vpop.xlane.xlu0 %154 }
 0x112   :  { %v210_v45 = vmul.f32 %v818_v18, %v167_v44  ;;  %v206_v37 = vmul.f32 %v818_v18, %v155_v36 }
 0x114   :  { %v853_v47 = vsub.f32 %v762_v43, %v210_v45  ;;  %v856_v48 = vsub.f32 %v759_v42, %v206_v37 }
 0x116   :  { %v242_v49 = vmul.f32 %v853_v47, %v853_v47  ;;  %v238_v50 = vmul.f32 %v856_v48, %v856_v48 }
 0x118   :  { %v158_v53 = vpop.xlane.xlu1 %157  ;;  %v268_v54 = vsel %vm149_vm1, %v242_v49, 0.0  ;;  %v256_v55 = vsel %vm149_vm1, %v238_v50, 0.0 }
 0x119   :  { %v207_v56 = vmul.f32 %v818_v18, %v158_v53  ;;  %269 = vadd.xlane.f32.xlu0 %v268_v54  ;;  %257 = vadd.xlane.f32.xlu2 %v256_v55  ;;  %v179_v43 = vpop.xlane.xlu0 %178 }
 0x11a   :  { %v214_v58 = vmul.f32 %v818_v18, %v179_v43 }
 0x11b   :  { %v867_v42 = vsub.f32 %v774_v51, %v207_v56 }
 0x11c   :  { %v870_v60 = vsub.f32 %v777_v52, %v214_v58 }
 0x11d   :  { %v239_v62 = vmul.f32 %v867_v42, %v867_v42 }
 0x11e   :  { %v246_v63 = vmul.f32 %v870_v60, %v870_v60 }
 0x11f   :  { %v259_v2 = vsel %vm149_vm1, %v239_v62, 0.0 }
 0x120   :  { %v185_v0 = vpop.xlane.xlu2 %184  ;;  %v182_v1 = vpop.xlane.xlu1 %181  ;;  %v280_v6 = vsel %vm149_vm1, %v246_v63, 0.0 }
 0x121   :  { %v216_v7 = vmul.f32 %v818_v18, %v185_v0  ;;  %v215_v51 = vmul.f32 %v818_v18, %v182_v1  ;;  %260 = vadd.xlane.f32.xlu0 %v259_v2  ;;  %281 = vadd.xlane.f32.xlu1 %v280_v6  ;;  %v170_v52 = vpop.xlane.xlu0 %169 }
 0x122   :  { %v211_v8 = vmul.f32 %v818_v18, %v170_v52 }
 0x123   :  { %v882_v9 = vsub.f32 %v790_v61, %v216_v7  ;;  %v885_v11 = vsub.f32 %v784_v57, %v215_v51 }
 0x124   :  { %v888_v12 = vsub.f32 %v787_v59, %v211_v8 }
 0x125   :  { %v247_v13 = vmul.f32 %v885_v11, %v885_v11  ;;  %v248_v14 = vmul.f32 %v882_v9, %v882_v9 }
 0x126   :  { %v243_v15 = vmul.f32 %v888_v12, %v888_v12 }
 0x127   :  { %v283_v16 = vsel %vm149_vm1, %v247_v13, 0.0  ;;  %v286_v57 = vsel %vm149_vm1, %v248_v14, 0.0 }
 0x128   :  { %v194_v17 = vpop.xlane.xlu2 %193  ;;  %v161_v61 = vpop.xlane.xlu1 %160  ;;  %284 = vadd.xlane.f32.xlu2 %v283_v16  ;;  %v271_v19 = vsel %vm149_vm1, %v243_v15, 0.0 }
 0x129   :  { %v219_v59 = vmul.f32 %v818_v18, %v194_v17  ;;  %v208_v20 = vmul.f32 %v818_v18, %v161_v61  ;;  %287 = vadd.xlane.f32.xlu0 %v286_v57  ;;  %272 = vadd.xlane.f32.xlu1 %v271_v19  ;;  %v197_v21 = vpop.xlane.xlu0 %196 }
 0x12a   :  { %v220_v26 = vmul.f32 %v818_v18, %v197_v21  ;;  %v955_v21 = vld [vmem:[%s1163_s3] ss:$0 sm:$0xff] }
 0x12b   :  { %v902_v22 = vsub.f32 %v799_v3, %v219_v59  ;;  %v905_v25 = vsub.f32 %v805_v5, %v208_v20  ;;  %v218_v5 = vmul.f32 %v818_v18, %v846_v39 }
 0x12c   :  { %v913_v29 = vsub.f32 %v802_v4, %v220_v26 }
 0x12d   :  { %v251_v27 = vmul.f32 %v902_v22, %v902_v22  ;;  %v240_v28 = vmul.f32 %v905_v25, %v905_v25  ;;  %v928_v40 = vsub.f32 %v765_v46, %v218_v5 }
 0x12e   :  { %v252_v38 = vmul.f32 %v913_v29, %v913_v29 }
 0x12f   :  { %v295_v31 = vsel %vm149_vm1, %v251_v27, 0.0  ;;  %v262_v3 = vsel %vm149_vm1, %v240_v28, 0.0  ;;  %v250_v39 = vmul.f32 %v928_v40, %v928_v40 }
 0x130   :  { %v173_v32 = vpop.xlane.xlu1 %172  ;;  %v298_v44 = vsel %vm149_vm1, %v252_v38, 0.0 }
 0x131   :  { %v212_v33 = vmul.f32 %v818_v18, %v173_v32  ;;  %296 = vadd.xlane.f32.xlu0 %v295_v31  ;;  %263 = vadd.xlane.f32.xlu1 %v262_v3  ;;  %v963_v31 = vld [vmem:[%s1164_s4] ss:$0 sm:$0xff] }
 0x133   :  { %v921_v35 = vsub.f32 %v814_v10, %v212_v33  ;;  %v292_v10 = vsel %vm149_vm1, %v250_v39, 0.0 }
 0x135   :  { %v244_v4 = vmul.f32 %v921_v35, %v921_v35 }
 0x137   :  { %v274_v41 = vsel %vm149_vm1, %v244_v4, 0.0 }
 0x138   :  { %275 = vadd.xlane.f32.xlu2 %v274_v41 }
 0x139   :  { %299 = vadd.xlane.f32.xlu1 %v298_v44 }
 0x140   :  { %293 = vadd.xlane.f32.xlu2 %v292_v10 }
 0x17c   :  { %v267_v36 = vpop.xlane.xlu2 %266  ;;  %v255_v45 = vpop.xlane.xlu1 %254 }
 0x17d   :  { %v305_v37 = vmul.f32 %v267_v36, %v818_v18  ;;  %v301_v49 = vmul.f32 %v255_v45, %v818_v18 }
 0x17f   :  { %v321_v46 = vadd.f32 1e-05, %v305_v37  ;;  %v317_v50 = vadd.f32 1e-05, %v301_v49 }
 0x181   :  { %605 = vrsqrt.f32 %v321_v46  ;;  %vm379_vm5 = vweird.f32 %v321_v46  ;;  %vm339_vm7 = vweird.f32 %v317_v50 }
 0x182   :  { %607 = vrsqrt.f32 %v317_v50 }
 0x184   :  { %v291_v53 = vpop.xlane.xlu1 %290  ;;  %v279_v54 = vpop.xlane.xlu0 %278 }
 0x185   :  { %v313_v55 = vmul.f32 %v291_v53, %v818_v18  ;;  %v309_v56 = vmul.f32 %v279_v54, %v818_v18 }
 0x187   :  { %v606_v43 = vpop.eup %605  ;;  %v939_v58 = vadd.f32 1e-05, %v313_v55  ;;  %v941_v62 = vadd.f32 1e-05, %v309_v56 }
 0x188   :  { %v608_v63 = vpop.eup %607  ;;  %v374_v0 = vmul.f32 %v606_v43, %v321_v46  ;;  %vm380_vm3 = vweird.f32 %v606_v43 }
 0x189   :  { %v334_v1 = vmul.f32 %v608_v63, %v317_v50  ;;  %609 = vrsqrt.f32 %v939_v58  ;;  %vm340_vm4 = vweird.f32 %v608_v63  ;;  %vm381_vm6 = vmor %vm379_vm5, %vm380_vm3  ;;  %vm459_vm11 = vweird.f32 %v939_v58 }
 0x18a   :  { %v375_v2 = vmul.f32 %v606_v43, %v374_v0  ;;  %611 = vrsqrt.f32 %v941_v62  ;;  %vm341_vm8 = vmor %vm339_vm7, %vm340_vm4  ;;  %vm419_vm13 = vweird.f32 %v941_v62 }
 0x18b   :  { %v335_v6 = vmul.f32 %v608_v63, %v334_v1 }
 0x18c   :  { %v376_v7 = vmul.f32 0.5, %v375_v2  ;;  %v258_v51 = vpop.xlane.xlu2 %257  ;;  %v270_v52 = vpop.xlane.xlu0 %269 }
 0x18d   :  { %v336_v8 = vmul.f32 0.5, %v335_v6  ;;  %v302_v13 = vmul.f32 %v258_v51, %v818_v18  ;;  %v306_v14 = vmul.f32 %v270_v52, %v818_v18 }
 0x18e   :  { %v377_v15 = vsub.f32 1.5, %v376_v7 }
 0x18f   :  { %v610_v16 = vpop.eup %609  ;;  %v337_v17 = vsub.f32 1.5, %v336_v8  ;;  %v947_v61 = vadd.f32 1e-05, %v302_v13  ;;  %v949_v57 = vadd.f32 1e-05, %v306_v14 }
 0x190   :  { %v612_v19 = vpop.eup %611  ;;  %v378_v59 = vmul.f32 %v606_v43, %v377_v15  ;;  %v454_v20 = vmul.f32 %v610_v16, %v939_v58  ;;  %vm460_vm9 = vweird.f32 %v610_v16 }
 0x191   :  { %v338_v26 = vmul.f32 %v608_v63, %v337_v17  ;;  %v414_v27 = vmul.f32 %v612_v19, %v941_v62  ;;  %613 = vrsqrt.f32 %v947_v61  ;;  %vm420_vm10 = vweird.f32 %v612_v19  ;;  %vm461_vm12 = vmor %vm459_vm11, %vm460_vm9 }
 0x192   :  { %v382_v28 = vsel %vm381_vm6, %v606_v43, %v378_v59  ;;  %v455_v32 = vmul.f32 %v610_v16, %v454_v20  ;;  %615 = vrsqrt.f32 %v949_v57  ;;  %vm421_vm14 = vmor %vm419_vm13, %vm420_vm10  ;;  %vm349_vm15 = vweird.f32 %v947_v61 }
 0x193   :  { %v497_v3 = vmul.f32 %v382_v28, %v823_v23  ;;  %v342_v33 = vsel %vm341_vm8, %v608_v63, %v338_v26  ;;  %v415_v5 = vmul.f32 %v612_v19, %v414_v27  ;;  %vm389_vm4 = vweird.f32 %v949_v57 }
 0x194   :  { %v493_v38 = vmul.f32 %v342_v33, %v826_v24  ;;  %v456_v4 = vmul.f32 0.5, %v455_v32  ;;  %v282_v41 = vpop.xlane.xlu1 %281  ;;  %v261_v44 = vpop.xlane.xlu0 %260 }
 0x195   :  { %v516_v39 = vmul.f32 %v955_v21, %v497_v3  ;;  %v416_v10 = vmul.f32 0.5, %v415_v5  ;;  %v310_v36 = vmul.f32 %v282_v41, %v818_v18  ;;  %v303_v45 = vmul.f32 %v261_v44, %v818_v18 }
 0x196   :  { %v512_v37 = vmul.f32 %v955_v21, %v493_v38  ;;  %v457_v49 = vsub.f32 1.5, %v456_v4 }
 0x197   :  { %v614_v23 = vpop.eup %613  ;;  %v535_v46 = vadd.f32 %v963_v31, %v516_v39  ;;  %v417_v50 = vsub.f32 1.5, %v416_v10  ;;  %v972_v24 = vadd.f32 1e-05, %v310_v36  ;;  %v974_v53 = vadd.f32 1e-05, %v303_v45 }
 0x198   :  { %v616_v54 = vpop.eup %615  ;;  %v531_v55 = vadd.f32 %v963_v31, %v512_v37  ;;  %v458_v56 = vmul.f32 %v610_v16, %v457_v49  ;;  %v344_v43 = vmul.f32 %v614_v23, %v947_v61  ;;  %vm350_vm0 = vweird.f32 %v614_v23 }
 0x199   :  { %551 = vst.msk [vmem:[%s1165_s5 + $0x20] sm:$0xff] %vm149_vm1, %v535_v46  ;;  %v418_v63 = vmul.f32 %v612_v19, %v417_v50  ;;  %v384_v0 = vmul.f32 %v616_v54, %v949_v57  ;;  %617 = vrsqrt.f32 %v972_v24  ;;  %vm390_vm2 = vweird.f32 %v616_v54  ;;  %vm351_vm3 = vmor %vm349_vm15, %vm350_vm0 }
 0x19a   :  { %547 = vst.msk [vmem:[%s1165_s5] sm:$0xff] %vm149_vm1, %v531_v55  ;;  %v462_v58 = vsel %vm461_vm12, %v610_v16, %v458_v56  ;;  %v345_v1 = vmul.f32 %v614_v23, %v344_v43  ;;  %619 = vrsqrt.f32 %v974_v53  ;;  %vm391_vm5 = vmor %vm389_vm4, %vm390_vm2  ;;  %vm429_vm8 = vweird.f32 %v972_v24 }
 0x19b   :  { %v505_v2 = vmul.f32 %v462_v58, %v840_v34  ;;  %v422_v6 = vsel %vm421_vm14, %v612_v19, %v418_v63  ;;  %v385_v7 = vmul.f32 %v616_v54, %v384_v0  ;;  %v285_v62 = vpop.xlane.xlu2 %284  ;;  %vm359_vm10 = vweird.f32 %v974_v53 }
 0x19c   :  { %v501_v51 = vmul.f32 %v422_v6, %v837_v30  ;;  %v346_v52 = vmul.f32 0.5, %v345_v1  ;;  %v311_v8 = vmul.f32 %v285_v62, %v818_v18  ;;  %v273_v13 = vpop.xlane.xlu1 %272  ;;  %v288_v14 = vpop.xlane.xlu0 %287 }
 0x19d   :  { %v524_v15 = vmul.f32 %v955_v21, %v505_v2  ;;  %v386_v16 = vmul.f32 0.5, %v385_v7  ;;  %v307_v17 = vmul.f32 %v273_v13, %v818_v18  ;;  %v312_v59 = vmul.f32 %v288_v14, %v818_v18 }
 0x19e   :  { %v520_v34 = vmul.f32 %v955_v21, %v501_v51  ;;  %v347_v19 = vsub.f32 1.5, %v346_v52  ;;  %v1000_v20 = vadd.f32 1e-05, %v311_v8 }
 0x19f   :  { %v618_v30 = vpop.eup %617  ;;  %v543_v26 = vadd.f32 %v963_v31, %v524_v15  ;;  %v387_v27 = vsub.f32 1.5, %v386_v16  ;;  %v1003_v28 = vadd.f32 1e-05, %v307_v17  ;;  %v1007_v38 = vadd.f32 1e-05, %v312_v59 }
 0x1a0   :  { %v620_v32 = vpop.eup %619  ;;  %v539_v3 = vadd.f32 %v963_v31, %v520_v34  ;;  %v348_v33 = vmul.f32 %v614_v23, %v347_v19  ;;  %v424_v5 = vmul.f32 %v618_v30, %v972_v24  ;;  %621 = vrsqrt.f32 %v1000_v20 }
 0x1a1   :  { %559 = vst.msk [vmem:[%s1165_s5 + $0x60] sm:$0xff] %vm149_vm1, %v543_v26  ;;  %v388_v4 = vmul.f32 %v616_v54, %v387_v27  ;;  %v354_v41 = vmul.f32 %v620_v32, %v974_v53  ;;  %623 = vrsqrt.f32 %v1003_v28  ;;  %vm430_vm6 = vweird.f32 %v618_v30 }
 0x1a2   :  { %555 = vst.msk [vmem:[%s1165_s5 + $0x40] sm:$0xff] %vm149_vm1, %v539_v3  ;;  %v352_v44 = vsel %vm351_vm3, %v614_v23, %v348_v33  ;;  %v425_v39 = vmul.f32 %v618_v30, %v424_v5  ;;  %625 = vrsqrt.f32 %v1007_v38  ;;  %vm360_vm7 = vweird.f32 %v620_v32  ;;  %vm431_vm9 = vmor %vm429_vm8, %vm430_vm6 }
 0x1a3   :  { %v494_v61 = vmul.f32 %v352_v44, %v856_v48  ;;  %v392_v10 = vsel %vm391_vm5, %v616_v54, %v388_v4  ;;  %v355_v36 = vmul.f32 %v620_v32, %v354_v41  ;;  %vm361_vm11 = vmor %vm359_vm10, %vm360_vm7  ;;  %vm439_vm12 = vweird.f32 %v1000_v20 }
 0x1a4   :  { %v498_v57 = vmul.f32 %v392_v10, %v853_v47  ;;  %v426_v45 = vmul.f32 0.5, %v425_v39  ;;  %v264_v37 = vpop.xlane.xlu1 %263  ;;  %v297_v49 = vpop.xlane.xlu0 %296  ;;  %vm399_vm13 = vweird.f32 %v1003_v28  ;;  %vm449_vm4 = vweird.f32 %v1007_v38 }
 0x1a5   :  { %v513_v46 = vmul.f32 %v955_v21, %v494_v61  ;;  %v356_v50 = vmul.f32 0.5, %v355_v36  ;;  %v304_v23 = vmul.f32 %v264_v37, %v818_v18  ;;  %v315_v55 = vmul.f32 %v297_v49, %v818_v18 }
 0x1a6   :  { %v517_v56 = vmul.f32 %v955_v21, %v498_v57  ;;  %v427_v43 = vsub.f32 1.5, %v426_v45  ;;  %v1031_v48 = vpop.eup %621 }
 0x1a7   :  { %v532_v47 = vadd.f32 %v963_v31, %v513_v46  ;;  %v357_v54 = vsub.f32 1.5, %v356_v50  ;;  %v1034_v63 = vadd.f32 1e-05, %v304_v23  ;;  %v1036_v0 = vadd.f32 1e-05, %v315_v55  ;;  %v1038_v58 = vpop.eup %623 }
 0x1a8   :  { %v536_v1 = vadd.f32 %v963_v31, %v517_v56  ;;  %v428_v2 = vmul.f32 %v618_v30, %v427_v43  ;;  %v434_v6 = vmul.f32 %v1031_v48, %v1000_v20  ;;  %v394_v62 = vmul.f32 %v1038_v58, %v1003_v28  ;;  %v626_v51 = vpop.eup %625 }
 0x1a9   :  { %548 = vst.msk [vmem:[%s1165_s5 + $0x8] sm:$0xff] %vm149_vm1, %v532_v47  ;;  %v358_v7 = vmul.f32 %v620_v32, %v357_v54  ;;  %627 = vrsqrt.f32 %v1034_v63  ;;  %v444_v14 = vmul.f32 %v626_v51, %v1007_v38  ;;  %vm440_vm14 = vweird.f32 %v1031_v48 }
 0x1aa   :  { %552 = vst.msk [vmem:[%s1165_s5 + $0x28] sm:$0xff] %vm149_vm1, %v536_v1  ;;  %v432_v24 = vsel %vm431_vm9, %v618_v30, %v428_v2  ;;  %v435_v52 = vmul.f32 %v1031_v48, %v434_v6  ;;  %629 = vrsqrt.f32 %v1036_v0  ;;  %v395_v13 = vmul.f32 %v1038_v58, %v394_v62  ;;  %vm441_vm0 = vmor %vm439_vm12, %vm440_vm14 }
 0x1ab   :  { %v502_v53 = vmul.f32 %v432_v24, %v870_v60  ;;  %v362_v8 = vsel %vm361_vm11, %v620_v32, %v358_v7  ;;  %v276_v15 = vpop.xlane.xlu2 %275  ;;  %v445_v19 = vmul.f32 %v626_v51, %v444_v14  ;;  %vm400_vm15 = vweird.f32 %v1038_v58 }
 0x1ac   :  { %v495_v16 = vmul.f32 %v362_v8, %v867_v42  ;;  %v436_v17 = vmul.f32 0.5, %v435_v52  ;;  %v396_v34 = vmul.f32 0.5, %v395_v13  ;;  %v308_v30 = vmul.f32 %v276_v15, %v818_v18  ;;  %v300_v60 = vpop.xlane.xlu1 %299  ;;  %vm401_vm3 = vmor %vm399_vm13, %vm400_vm15 }
 0x1ad   :  { %v521_v59 = vmul.f32 %v955_v21, %v502_v53  ;;  %v446_v33 = vmul.f32 0.5, %v445_v19  ;;  %v316_v61 = vmul.f32 %v300_v60, %v818_v18  ;;  %vm450_vm2 = vweird.f32 %v626_v51 }
 0x1ae   :  { %v514_v26 = vmul.f32 %v955_v21, %v495_v16  ;;  %v437_v27 = vsub.f32 1.5, %v436_v17  ;;  %v397_v3 = vsub.f32 1.5, %v396_v34  ;;  %v1071_v5 = vadd.f32 1e-05, %v308_v30  ;;  %vm451_vm5 = vmor %vm449_vm4, %vm450_vm2 }
 0x1af   :  { %v628_v42 = vpop.eup %627  ;;  %v540_v32 = vadd.f32 %v963_v31, %v521_v59  ;;  %v447_v36 = vsub.f32 1.5, %v446_v33  ;;  %v332_v43 = vadd.f32 1e-05, %v316_v61  ;;  %vm369_vm8 = vweird.f32 %v1034_v63 }
 0x1b0   :  { %v630_v4 = vpop.eup %629  ;;  %v533_v41 = vadd.f32 %v963_v31, %v514_v26  ;;  %v438_v44 = vmul.f32 %v1031_v48, %v437_v27  ;;  %v364_v39 = vmul.f32 %v628_v42, %v1034_v63  ;;  %v398_v10 = vmul.f32 %v1038_v58, %v397_v3 }
 0x1b1   :  { %556 = vst.msk [vmem:[%s1165_s5 + $0x48] sm:$0xff] %vm149_vm1, %v540_v32  ;;  %v474_v57 = vmul.f32 %v630_v4, %v1036_v0  ;;  %631 = vrsqrt.f32 %v1071_v5  ;;  %v448_v46 = vmul.f32 %v626_v51, %v447_v36  ;;  %vm370_vm6 = vweird.f32 %v628_v42 }
 0x1b2   :  { %549 = vst.msk [vmem:[%s1165_s5 + $0x10] sm:$0xff] %vm149_vm1, %v533_v41  ;;  %v442_v45 = vsel %vm441_vm0, %v1031_v48, %v438_v44  ;;  %v365_v20 = vmul.f32 %v628_v42, %v364_v39  ;;  %v402_v49 = vsel %vm401_vm3, %v1038_v58, %v398_v10  ;;  %633 = vrsqrt.f32 %v332_v43  ;;  %vm371_vm9 = vmor %vm369_vm8, %vm370_vm6 }
 0x1b3   :  { %v503_v37 = vmul.f32 %v442_v45, %v885_v11  ;;  %v475_v50 = vmul.f32 %v630_v4, %v474_v57  ;;  %v294_v23 = vpop.xlane.xlu2 %293  ;;  %v499_v55 = vmul.f32 %v402_v49, %v888_v12  ;;  %v452_v38 = vsel %vm451_vm5, %v626_v51, %v448_v46 }
 0x1b4   :  { %v366_v56 = vmul.f32 0.5, %v365_v20  ;;  %v314_v28 = vmul.f32 %v294_v23, %v818_v18  ;;  %v504_v11 = vmul.f32 %v452_v38, %v882_v9  ;;  %vm480_vm7 = vweird.f32 %v630_v4 }
 0x1b5   :  { %v522_v48 = vmul.f32 %v955_v21, %v503_v37  ;;  %v476_v47 = vmul.f32 0.5, %v475_v50  ;;  %v518_v54 = vmul.f32 %v955_v21, %v499_v55  ;;  %vm479_vm10 = vweird.f32 %v1036_v0 }
 0x1b6   :  { %v367_v58 = vsub.f32 1.5, %v366_v56  ;;  %v330_v12 = vadd.f32 1e-05, %v314_v28  ;;  %v523_v18 = vmul.f32 %v955_v21, %v504_v11  ;;  %vm481_vm11 = vmor %vm479_vm10, %vm480_vm7  ;;  %vm409_vm13 = vweird.f32 %v1071_v5 }
 0x1b7   :  { %v541_v1 = vadd.f32 %v963_v31, %v522_v48  ;;  %v477_v2 = vsub.f32 1.5, %v476_v47  ;;  %v632_v6 = vpop.eup %631  ;;  %v537_v7 = vadd.f32 %v963_v31, %v518_v54  ;;  %vm489_vm0 = vweird.f32 %v332_v43 }
 0x1b8   :  { %v368_v62 = vmul.f32 %v628_v42, %v367_v58  ;;  %v404_v51 = vmul.f32 %v632_v6, %v1071_v5  ;;  %635 = vrsqrt.f32 %v330_v12  ;;  %v542_v63 = vadd.f32 %v963_v31, %v523_v18  ;;  %v634_v13 = vpop.eup %633 }
 0x1b9   :  { %557 = vst.msk [vmem:[%s1165_s5 + $0x50] sm:$0xff] %vm149_vm1, %v541_v1  ;;  %v478_v9 = vmul.f32 %v630_v4, %v477_v2  ;;  %v484_v16 = vmul.f32 %v634_v13, %v332_v43  ;;  %vm410_vm12 = vweird.f32 %v632_v6  ;;  %vm490_vm15 = vweird.f32 %v634_v13 }
 0x1ba   :  { %553 = vst.msk [vmem:[%s1165_s5 + $0x30] sm:$0xff] %vm149_vm1, %v537_v7  ;;  %v372_v24 = vsel %vm371_vm9, %v628_v42, %v368_v62  ;;  %v405_v8 = vmul.f32 %v632_v6, %v404_v51  ;;  %vm411_vm14 = vmor %vm409_vm13, %vm410_vm12  ;;  %vm469_vm4 = vweird.f32 %v330_v12 }
 0x1bb   :  { %v496_v52 = vmul.f32 %v372_v24, %v905_v25  ;;  %v482_v53 = vsel %vm481_vm11, %v630_v4, %v478_v9  ;;  %558 = vst.msk [vmem:[%s1165_s5 + $0x58] sm:$0xff] %vm149_vm1, %v542_v63  ;;  %v485_v19 = vmul.f32 %v634_v13, %v484_v16  ;;  %vm491_vm2 = vmor %vm489_vm0, %vm490_vm15 }
 0x1bc   :  { %v507_v0 = vmul.f32 %v482_v53, %v902_v22  ;;  %v406_v15 = vmul.f32 0.5, %v405_v8 }
 0x1bd   :  { %v515_v14 = vmul.f32 %v955_v21, %v496_v52  ;;  %v486_v26 = vmul.f32 0.5, %v485_v19 }
 0x1be   :  { %v526_v17 = vmul.f32 %v955_v21, %v507_v0  ;;  %v636_v59 = vpop.eup %635  ;;  %v407_v25 = vsub.f32 1.5, %v406_v15 }
 0x1bf   :  { %v534_v34 = vadd.f32 %v963_v31, %v515_v14  ;;  %v464_v60 = vmul.f32 %v636_v59, %v330_v12  ;;  %v487_v32 = vsub.f32 1.5, %v486_v26  ;;  %vm470_vm3 = vweird.f32 %v636_v59 }
 0x1c0   :  { %v545_v30 = vadd.f32 %v963_v31, %v526_v17  ;;  %v408_v22 = vmul.f32 %v632_v6, %v407_v25  ;;  %vm471_vm5 = vmor %vm469_vm4, %vm470_vm3 }
 0x1c1   :  { %550 = vst.msk [vmem:[%s1165_s5 + $0x18] sm:$0xff] %vm149_vm1, %v534_v34  ;;  %v465_v27 = vmul.f32 %v636_v59, %v464_v60  ;;  %v488_v4 = vmul.f32 %v634_v13, %v487_v32 }
 0x1c2   :  { %561 = vst.msk [vmem:[%s1165_s5 + $0x70] sm:$0xff] %vm149_vm1, %v545_v30  ;;  %v412_v42 = vsel %vm411_vm14, %v632_v6, %v408_v22 }
 0x1c3   :  { %v500_v3 = vmul.f32 %v412_v42, %v921_v35  ;;  %v466_v33 = vmul.f32 0.5, %v465_v27  ;;  %v492_v44 = vsel %vm491_vm2, %v634_v13, %v488_v4 }
 0x1c4   :  { %v508_v61 = vmul.f32 %v492_v44, %v913_v29 }
 0x1c5   :  { %v519_v41 = vmul.f32 %v955_v21, %v500_v3  ;;  %v467_v5 = vsub.f32 1.5, %v466_v33 }
 0x1c6   :  { %v527_v35 = vmul.f32 %v955_v21, %v508_v61 }
 0x1c7   :  { %v538_v39 = vadd.f32 %v963_v31, %v519_v41  ;;  %v468_v10 = vmul.f32 %v636_v59, %v467_v5 }
 0x1c8   :  { %v546_v45 = vadd.f32 %v963_v31, %v527_v35 }
 0x1c9   :  { %554 = vst.msk [vmem:[%s1165_s5 + $0x38] sm:$0xff] %vm149_vm1, %v538_v39  ;;  %v472_v36 = vsel %vm471_vm5, %v636_v59, %v468_v10 }
 0x1ca   :  { %v506_v57 = vmul.f32 %v472_v36, %v928_v40  ;;  %562 = vst.msk [vmem:[%s1165_s5 + $0x78] sm:$0xff] %vm149_vm1, %v546_v45 }
 0x1cc   :  { %v525_v20 = vmul.f32 %v955_v21, %v506_v57 }
 0x1ce   :  { %v544_v29 = vadd.f32 %v963_v31, %v525_v20 }
 0x1d0   :  { %560 = vst.msk [vmem:[%s1165_s5 + $0x68] sm:$0xff] %vm149_vm1, %v544_v29 }

</bundles_post_ra>
